<compile_context>
chip_gen: v7x
topology: tpu7x:2x2x1
jax: 0.10.0
libtpu: 0.0.40
codegen_flags: <defaults>
</compile_context>

<pallas_src>
import jax
import jax.numpy as jnp
from jax import lax
from jax.experimental import pallas as pl
from jax.experimental.pallas import tpu as pltpu

# ----------------------------------------------------------------------------
# Config (mirrors the PyTorch module's __init__ config dict)
# ----------------------------------------------------------------------------
CONFIG = dict(
    channels1=8, channels2=8, channels3=8,
    kernel_size1=3, kernel_size2=3, kernel_size3=3,
    seq_len=8, extractor_size=16, dropout=0.1,
)
N_FEATURES = 4
BN_EPS = 1e-5


def _round_up(n, m):
    return ((n + m - 1) // m) * m


# ----------------------------------------------------------------------------
# Pallas kernel: 4 stacked matmuls (3 banded convs + linear), bias + ReLU
# ----------------------------------------------------------------------------
def _extractor_kernel(x_ref, w1_ref, b1_ref, w2_ref, b2_ref,
                      w3_ref, b3_ref, wl_ref, bl_ref, o_ref):
    def layer(h, w_ref, b_ref):
        # bf16 x bf16 MXU matmul, f32 accumulation; bias/ReLU on the VPU in f32.
        y = jnp.dot(h, w_ref[...], preferred_element_type=jnp.float32)
        return jnp.maximum(y + b_ref[...], 0.0)

    h = x_ref[...].astype(jnp.bfloat16)                    # (TN, L*F) cast in-kernel
    h = layer(h, w1_ref, b1_ref).astype(jnp.bfloat16)      # (TN, L*C1)
    h = layer(h, w2_ref, b2_ref).astype(jnp.bfloat16)      # (TN, L*C2)
    h = layer(h, w3_ref, b3_ref).astype(jnp.bfloat16)      # (TN, L*C3)
    # Dropout is identity in eval mode.
    o_ref[...] = layer(h, wl_ref, bl_ref)                  # (TN, E) f32


def conv1d_extractor(x, p, *, tile_n=1024):
    """x: (B, S, L, F) float32 -> (B, E, S) float32 (matches the torch module)."""
    B, S, L, F = x.shape
    N = B * S
    E = p["bl"].shape[1]

    # (B,S,L,F) -> (N, L*F); contiguous reshape, no copy. Cast happens in-kernel.
    x2 = x.reshape(N, L * F)

    # Tile the sample axis; small N collapses to a single full-array block.
    tn = tile_n if N >= tile_n else _round_up(N, 8)
    n_pad = _round_up(N, tn)
    if n_pad != N:
        x2 = jnp.pad(x2, ((0, n_pad - N), (0, 0)))

    args = (x2, p["w1"], p["b1"], p["w2"], p["b2"],
            p["w3"], p["b3"], p["wl"], p["bl"])

    def rep_spec(a):   # weights/biases: whole array, constant block -> VMEM-resident
        nd = a.ndim
        return pl.BlockSpec(a.shape, lambda i, _nd=nd: (0,) * _nd)

    in_specs = [pl.BlockSpec((tn, L * F), lambda i: (i, 0))]
    in_specs += [rep_spec(a) for a in args[1:]]

    out = pl.pallas_call(
        _extractor_kernel,
        out_shape=jax.ShapeDtypeStruct((n_pad, E), jnp.float32),
        grid=(n_pad // tn,),
        in_specs=in_specs,
        out_specs=pl.BlockSpec((tn, E), lambda i: (i, 0)),
        compiler_params=pltpu.CompilerParams(
            dimension_semantics=("parallel",)),
    )(*args)

    out = out[:N]
    # Module contract is (B, E, S); tiny host-side transpose.
    return out.reshape(B, S, E).transpose(0, 2, 1)


# ----------------------------------------------------------------------------
# Deterministic parameter construction (synthetic; no checkpoint loading)
# ----------------------------------------------------------------------------
def init_raw_params(key):
    cfg = CONFIG
    f = N_FEATURES
    c1, c2, c3 = cfg["channels1"], cfg["channels2"], cfg["channels3"]
    k1, k2, k3 = cfg["kernel_size1"], cfg["kernel_size2"], cfg["kernel_size3"]
    L, E = cfg["seq_len"], cfg["extractor_size"]

    keys = iter(jax.random.split(key, 32))
    nrm = lambda shape, s=0.2: s * jax.random.normal(next(keys), shape, jnp.float32)

    raw = {
        "conv1_w": nrm((c1, f, k1)),  "conv1_b": nrm((c1,)),
        "conv2_w": nrm((c2, c1, k2)), "conv2_b": nrm((c2,)),
        "conv3_w": nrm((c3, c2, k3)), "conv3_b": nrm((c3,)),
        "lin_w":   nrm((E, c3 * L)),  "lin_b":   nrm((E,)),
    }
    for i, c in ((1, c1), (2, c2), (3, c3)):
        raw[f"bn{i}_gamma"] = 1.0 + nrm((c,), 0.1)
        raw[f"bn{i}_beta"] = nrm((c,), 0.1)
        raw[f"bn{i}_mean"] = nrm((c,), 0.1)
        raw[f"bn{i}_var"] = 1.0 + 0.5 * jax.random.uniform(next(keys), (c,), jnp.float32)
    return raw


def build_kernel_params(raw, L, dtype=jnp.bfloat16):
    """Fold BN into conv, express each conv as a block-banded (L*Cin, L*Cout)
    matrix with 'same' padding zeros baked in, and pre-permute the Linear
    weight to the kernel's position-major column layout."""
    p = {}
    for i in (1, 2, 3):
        w, b = raw[f"conv{i}_w"], raw[f"conv{i}_b"]          # (Cout,Cin,K), (Cout,)
        g, be = raw[f"bn{i}_gamma"], raw[f"bn{i}_beta"]
        m, v = raw[f"bn{i}_mean"], raw[f"bn{i}_var"]
        scale = g / jnp.sqrt(v + BN_EPS)
        w_f = w * scale[:, None, None]                       # (Cout, Cin, K)
        b_f = (b - m) * scale + be                           # (Cout,)

        cout, cin, k = w_f.shape
        pad = (k - 1) // 2
        wb = jnp.zeros((L * cin, L * cout), jnp.float32)
        for lo in range(L):
            for kk in range(k):
                li = lo + kk - pad
                if 0 <= li < L:
                    wb = wb.at[li * cin:(li + 1) * cin,
                               lo * cout:(lo + 1) * cout].set(w_f[:, :, kk].T)
        p[f"w{i}"] = wb.astype(dtype)
        p[f"b{i}"] = jnp.tile(b_f, L).reshape(1, L * cout).astype(jnp.float32)

    E = raw["lin_w"].shape[0]
    c3 = raw["conv3_w"].shape[0]
    # kernel column layout is l*C3 + c ; torch flatten is c*L + l
    wl = raw["lin_w"].reshape(E, c3, L).transpose(2, 1, 0).reshape(L * c3, E)
    p["wl"] = wl.astype(dtype)
    p["bl"] = raw["lin_b"].reshape(1, E).astype(jnp.float32)
    return p


# ----------------------------------------------------------------------------
# Pure-JAX reference (mirrors the PyTorch forward, eval mode, f32)
# ----------------------------------------------------------------------------
def reference_forward(x, raw):
    B, S, L, F = x.shape

    def conv_bn_relu(h, w, b, g, be, m, v):
        k = w.shape[-1]
        pad = (k - 1) // 2
        y = lax.conv_general_dilated(h, w, window_strides=(1,),
                                     padding=[(pad, pad)],
                                     dimension_numbers=("NCH", "OIH", "NCH"),
                                     precision=lax.Precision.HIGHEST)
        y = y + b[None, :, None]
        y = ((y - m[None, :, None]) / jnp.sqrt(v[None, :, None] + BN_EPS)
             * g[None, :, None] + be[None, :, None])
        return jnp.maximum(y, 0.0)

    outs = []
    for i in range(S):
        xi = jnp.transpose(x[:, i], (0, 2, 1))                  # (B, F, L)
        h = conv_bn_relu(xi, raw["conv1_w"], raw["conv1_b"], raw["bn1_gamma"],
                         raw["bn1_beta"], raw["bn1_mean"], raw["bn1_var"])
        h = conv_bn_relu(h, raw["conv2_w"], raw["conv2_b"], raw["bn2_gamma"],
                         raw["bn2_beta"], raw["bn2_mean"], raw["bn2_var"])
        h = conv_bn_relu(h, raw["conv3_w"], raw["conv3_b"], raw["bn3_gamma"],
                         raw["bn3_beta"], raw["bn3_mean"], raw["bn3_var"])
        flat = h.reshape(B, -1)                                 # channel-major flatten
        o = jnp.maximum(jnp.dot(flat, raw["lin_w"].T,
                                precision=lax.Precision.HIGHEST) + raw["lin_b"], 0.0)
        outs.append(o[:, :, None])
    return jnp.concatenate(outs, axis=2)                        # (B, E, S)


# ----------------------------------------------------------------------------
if __name__ == "__main__":
    key = jax.random.PRNGKey(0)
    kx, kp = jax.random.split(key)

    B, S = 2, 4
    L, F = CONFIG["seq_len"], N_FEATURES
    x = jax.random.normal(kx, (B, S, L, F), jnp.float32)

    raw = init_raw_params(kp)
    params = build_kernel_params(raw, L)

    out = jax.block_until_ready(conv1d_extractor(x, params))

    ref = reference_forward(x, raw)
    assert out.shape == (B, CONFIG["extractor_size"], S), out.shape
    # Tolerance accounts for bf16 matmul operands (f32 accumulation) through
    # four stacked matmul+ReLU stages; observed error is ~1e-2.
    max_err = float(jnp.max(jnp.abs(out - ref)))
    assert max_err < 5e-2, f"kernel/reference mismatch, max abs err = {max_err}"
    print("KERNEL_OK")
</pallas_src>

<mosaic_0001>
module attributes {stable_mosaic.version = 11 : i64} {
  func.func @_extractor_kernel(%arg0: i32, %arg1: memref<8x32xf32, #tpu.memory_space<vmem>>, %arg2: memref<32x64xbf16, #tpu.memory_space<vmem>>, %arg3: memref<1x64xf32, #tpu.memory_space<vmem>>, %arg4: memref<64x64xbf16, #tpu.memory_space<vmem>>, %arg5: memref<1x64xf32, #tpu.memory_space<vmem>>, %arg6: memref<64x64xbf16, #tpu.memory_space<vmem>>, %arg7: memref<1x64xf32, #tpu.memory_space<vmem>>, %arg8: memref<64x16xbf16, #tpu.memory_space<vmem>>, %arg9: memref<1x16xf32, #tpu.memory_space<vmem>>, %arg10: memref<8x16xf32, #tpu.memory_space<vmem>>) attributes {dimension_semantics = [#tpu.dimension_semantics<parallel>], iteration_bounds = array<i64: 1>, scalar_prefetch = 0 : i64, scratch_operands = 0 : i64, tpu.core_type = #tpu.core_type<tc>, window_params = [{transform_indices = @transform_0, window_bounds = array<i64: 8, 32>}, {pipeline_mode = #tpu.pipeline_mode<synchronous>, transform_indices = @transform_1, window_bounds = array<i64: 32, 64>}, {pipeline_mode = #tpu.pipeline_mode<synchronous>, transform_indices = @transform_2, window_bounds = array<i64: 1, 64>}, {pipeline_mode = #tpu.pipeline_mode<synchronous>, transform_indices = @transform_3, window_bounds = array<i64: 64, 64>}, {pipeline_mode = #tpu.pipeline_mode<synchronous>, transform_indices = @transform_4, window_bounds = array<i64: 1, 64>}, {pipeline_mode = #tpu.pipeline_mode<synchronous>, transform_indices = @transform_5, window_bounds = array<i64: 64, 64>}, {pipeline_mode = #tpu.pipeline_mode<synchronous>, transform_indices = @transform_6, window_bounds = array<i64: 1, 64>}, {pipeline_mode = #tpu.pipeline_mode<synchronous>, transform_indices = @transform_7, window_bounds = array<i64: 64, 16>}, {pipeline_mode = #tpu.pipeline_mode<synchronous>, transform_indices = @transform_8, window_bounds = array<i64: 1, 16>}, {transform_indices = @transform_9, window_bounds = array<i64: 8, 16>}]} {
    %c0 = arith.constant 0 : index
    %c0_0 = arith.constant 0 : index
    %0 = vector.load %arg1[%c0, %c0_0] : memref<8x32xf32, #tpu.memory_space<vmem>>, vector<8x32xf32>
    %1 = arith.truncf %0 : vector<8x32xf32> to vector<8x32xbf16>
    %c0_1 = arith.constant 0 : index
    %c0_2 = arith.constant 0 : index
    %2 = vector.load %arg2[%c0_1, %c0_2] : memref<32x64xbf16, #tpu.memory_space<vmem>>, vector<32x64xbf16>
    %cst = arith.constant dense<0.000000e+00> : vector<8x64xf32>
    %3 = tpu.matmul %1, %2, %cst {dimension_numbers = #tpu.dot_dimension_numbers<[1], [0], [0], [1], [0, 0, 1, 1], [], []>} : vector<8x32xbf16>, vector<32x64xbf16>, vector<8x64xf32> -> vector<8x64xf32>
    %c0_3 = arith.constant 0 : index
    %c0_4 = arith.constant 0 : index
    %4 = vector.load %arg3[%c0_3, %c0_4] : memref<1x64xf32, #tpu.memory_space<vmem>>, vector<1x64xf32>
    %5 = vector.broadcast %4 : vector<1x64xf32> to vector<8x64xf32>
    %6 = arith.addf %3, %5 : vector<8x64xf32>
    %cst_5 = arith.constant 0.000000e+00 : f32
    %7 = vector.broadcast %cst_5 : f32 to vector<8x64xf32>
    %8 = arith.maximumf %6, %7 : vector<8x64xf32>
    %9 = arith.truncf %8 : vector<8x64xf32> to vector<8x64xbf16>
    %c0_6 = arith.constant 0 : index
    %c0_7 = arith.constant 0 : index
    %10 = vector.load %arg4[%c0_6, %c0_7] : memref<64x64xbf16, #tpu.memory_space<vmem>>, vector<64x64xbf16>
    %cst_8 = arith.constant dense<0.000000e+00> : vector<8x64xf32>
    %11 = tpu.matmul %9, %10, %cst_8 {dimension_numbers = #tpu.dot_dimension_numbers<[1], [0], [0], [1], [0, 0, 1, 1], [], []>} : vector<8x64xbf16>, vector<64x64xbf16>, vector<8x64xf32> -> vector<8x64xf32>
    %c0_9 = arith.constant 0 : index
    %c0_10 = arith.constant 0 : index
    %12 = vector.load %arg5[%c0_9, %c0_10] : memref<1x64xf32, #tpu.memory_space<vmem>>, vector<1x64xf32>
    %13 = vector.broadcast %12 : vector<1x64xf32> to vector<8x64xf32>
    %14 = arith.addf %11, %13 : vector<8x64xf32>
    %cst_11 = arith.constant 0.000000e+00 : f32
    %15 = vector.broadcast %cst_11 : f32 to vector<8x64xf32>
    %16 = arith.maximumf %14, %15 : vector<8x64xf32>
    %17 = arith.truncf %16 : vector<8x64xf32> to vector<8x64xbf16>
    %c0_12 = arith.constant 0 : index
    %c0_13 = arith.constant 0 : index
    %18 = vector.load %arg6[%c0_12, %c0_13] : memref<64x64xbf16, #tpu.memory_space<vmem>>, vector<64x64xbf16>
    %cst_14 = arith.constant dense<0.000000e+00> : vector<8x64xf32>
    %19 = tpu.matmul %17, %18, %cst_14 {dimension_numbers = #tpu.dot_dimension_numbers<[1], [0], [0], [1], [0, 0, 1, 1], [], []>} : vector<8x64xbf16>, vector<64x64xbf16>, vector<8x64xf32> -> vector<8x64xf32>
    %c0_15 = arith.constant 0 : index
    %c0_16 = arith.constant 0 : index
    %20 = vector.load %arg7[%c0_15, %c0_16] : memref<1x64xf32, #tpu.memory_space<vmem>>, vector<1x64xf32>
    %21 = vector.broadcast %20 : vector<1x64xf32> to vector<8x64xf32>
    %22 = arith.addf %19, %21 : vector<8x64xf32>
    %cst_17 = arith.constant 0.000000e+00 : f32
    %23 = vector.broadcast %cst_17 : f32 to vector<8x64xf32>
    %24 = arith.maximumf %22, %23 : vector<8x64xf32>
    %25 = arith.truncf %24 : vector<8x64xf32> to vector<8x64xbf16>
    %c0_18 = arith.constant 0 : index
    %c0_19 = arith.constant 0 : index
    %26 = vector.load %arg8[%c0_18, %c0_19] : memref<64x16xbf16, #tpu.memory_space<vmem>>, vector<64x16xbf16>
    %cst_20 = arith.constant dense<0.000000e+00> : vector<8x16xf32>
    %27 = tpu.matmul %25, %26, %cst_20 {dimension_numbers = #tpu.dot_dimension_numbers<[1], [0], [0], [1], [0, 0, 1, 1], [], []>} : vector<8x64xbf16>, vector<64x16xbf16>, vector<8x16xf32> -> vector<8x16xf32>
    %c0_21 = arith.constant 0 : index
    %c0_22 = arith.constant 0 : index
    %28 = vector.load %arg9[%c0_21, %c0_22] : memref<1x16xf32, #tpu.memory_space<vmem>>, vector<1x16xf32>
    %29 = vector.broadcast %28 : vector<1x16xf32> to vector<8x16xf32>
    %30 = arith.addf %27, %29 : vector<8x16xf32>
    %cst_23 = arith.constant 0.000000e+00 : f32
    %31 = vector.broadcast %cst_23 : f32 to vector<8x16xf32>
    %32 = arith.maximumf %30, %31 : vector<8x16xf32>
    %c0_24 = arith.constant 0 : index
    %c0_25 = arith.constant 0 : index
    %33 = vector.load %arg10[%c0_24, %c0_25] : memref<8x16xf32, #tpu.memory_space<vmem>>, vector<8x16xf32>
    tpu.vector_store %arg10[%c0_24, %c0_25], %32 {strides = array<i32>} : memref<8x16xf32, #tpu.memory_space<vmem>>, vector<8x16xf32>,
    return
  }
  func.func @transform_0(%arg0: i32) -> (i32, i32) {
    %c0_i32 = arith.constant 0 : i32
    %c0_i32_0 = arith.constant 0 : i32
    return %arg0, %c0_i32 : i32, i32
  }
  func.func @transform_1(%arg0: i32) -> (i32, i32) {
    %c0_i32 = arith.constant 0 : i32
    %c0_i32_0 = arith.constant 0 : i32
    %c0_i32_1 = arith.constant 0 : i32
    return %c0_i32, %c0_i32_0 : i32, i32
  }
  func.func @transform_2(%arg0: i32) -> (i32, i32) {
    %c0_i32 = arith.constant 0 : i32
    %c0_i32_0 = arith.constant 0 : i32
    %c0_i32_1 = arith.constant 0 : i32
    return %c0_i32, %c0_i32_0 : i32, i32
  }
  func.func @transform_3(%arg0: i32) -> (i32, i32) {
    %c0_i32 = arith.constant 0 : i32
    %c0_i32_0 = arith.constant 0 : i32
    %c0_i32_1 = arith.constant 0 : i32
    return %c0_i32, %c0_i32_0 : i32, i32
  }
  func.func @transform_4(%arg0: i32) -> (i32, i32) {
    %c0_i32 = arith.constant 0 : i32
    %c0_i32_0 = arith.constant 0 : i32
    %c0_i32_1 = arith.constant 0 : i32
    return %c0_i32, %c0_i32_0 : i32, i32
  }
  func.func @transform_5(%arg0: i32) -> (i32, i32) {
    %c0_i32 = arith.constant 0 : i32
    %c0_i32_0 = arith.constant 0 : i32
    %c0_i32_1 = arith.constant 0 : i32
    return %c0_i32, %c0_i32_0 : i32, i32
  }
  func.func @transform_6(%arg0: i32) -> (i32, i32) {
    %c0_i32 = arith.constant 0 : i32
    %c0_i32_0 = arith.constant 0 : i32
    %c0_i32_1 = arith.constant 0 : i32
    return %c0_i32, %c0_i32_0 : i32, i32
  }
  func.func @transform_7(%arg0: i32) -> (i32, i32) {
    %c0_i32 = arith.constant 0 : i32
    %c0_i32_0 = arith.constant 0 : i32
    %c0_i32_1 = arith.constant 0 : i32
    return %c0_i32, %c0_i32_0 : i32, i32
  }
  func.func @transform_8(%arg0: i32) -> (i32, i32) {
    %c0_i32 = arith.constant 0 : i32
    %c0_i32_0 = arith.constant 0 : i32
    %c0_i32_1 = arith.constant 0 : i32
    return %c0_i32, %c0_i32_0 : i32, i32
  }
  func.func @transform_9(%arg0: i32) -> (i32, i32) {
    %c0_i32 = arith.constant 0 : i32
    %c0_i32_0 = arith.constant 0 : i32
    return %arg0, %c0_i32 : i32, i32
  }
}

</mosaic_0001>

<bundles_post_ra>
// kernel: tpu_custom_call.1
= control target key start
LH: loop header
LB: loop body
LE: loop exit
PB: predicated region body
PF: predicated region fallthrough
CT: control target
= control target key end

     0   :  { %14 = vsyncpa [#allocation3], 0  ;;  %s745_s0 = inlined_call_operand.hbm [shape: f32[8,32], index: 0, kind: input, shape index: {}]   ;;  %s746_s1 = inlined_call_operand.vmem [shape: bf16[32,64], index: 1, kind: input, shape index: {}]   ;;  %s747_s2 = inlined_call_operand.vmem [shape: f32[1,64], index: 2, kind: input, shape index: {}]   ;;  %s748_s3 = inlined_call_operand.vmem [shape: bf16[64,64], index: 3, kind: input, shape index: {}]   ;;  %s749_s4 = inlined_call_operand.vmem [shape: f32[1,64], index: 4, kind: input, shape index: {}]   ;;  %s750_s5 = inlined_call_operand.hbm [shape: bf16[64,64], index: 5, kind: input, shape index: {}]   ;;  %s751_s6 = inlined_call_operand.vmem [shape: f32[1,64], index: 6, kind: input, shape index: {}]   ;;  %s752_s7 = inlined_call_operand.vmem [shape: bf16[64,16], index: 7, kind: input, shape index: {}]   ;;  %s753_s8 = inlined_call_operand.vmem [shape: f32[1,16], index: 8, kind: input, shape index: {}]   ;;  %s754_s9 = inlined_call_operand.hbm [shape: f32[8,16], index: 9, kind: output, shape index: {}]  }
   0x1   :  { %15 = vsyncpa [#allocation6], 0 }
   0x2   :  { %16 = vsyncpa [#allocation4], 0  ;;  %s578_s30 = smov [#allocation2]   ;;  %s579_s11 = smov [#allocation5]  }
   0x3   :  { %s23_s10 = sshll.u32 %s578_s30, 4  ;;  %s40_s12 = sshll.u32 %s579_s11, 4  ;;  %s24_s10 = int_to_ptr.vmem [resolvable:$true] %s23_s10  ;;  %s635_s12 = int_to_ptr.vmem [resolvable:$true] %s40_s12 }
   0x4   :  { %s506_s15 = scalar_lea.hbm %s745_s0, 128 }
   0x5   :  { %p507_p0 = scmp.ne.s32.totalorder %s745_s0, %s506_s15  ;;  %p510_p1 = scmp.lt.u32.totalorder %s506_s15, %s745_s0 }
   0x7   :  { %p512_p2 = pnand %p510_p1, %p507_p0 }
   0x9   :  { %515 = shalt.err (!%p512_p2)
}
   0xa   :  { %s516_s20 = scalar_lea.vmem %s24_s10, 128  ;;  %p521_p4 = scmp.lt.s32.totalorder %s24_s10, %s24_s10 }
   0xb   :  { %p517_p3 = scmp.ne.s32.totalorder %s24_s10, %s516_s20  ;;  %p522_p5 = scmp.lt.s32.totalorder %s516_s20, %s516_s20 }
   0xd   :  { %p523_p6 = por %p522_p5, %p521_p4 }
   0xf   :  { %p524_p7 = pnand %p523_p6, %p517_p3 }
  0x11   :  { %527 = shalt.err (!%p524_p7)
}
  0x12   :  { %26 = dma.hbm_to_vmem [thread:$0]  %s745_s0, 128, %s24_s10, [#allocation3]  }
  0x13   :  { %s528_s25 = scalar_lea.hbm %s750_s5, 512 }
  0x14   :  { %p529_p8 = scmp.ne.s32.totalorder %s750_s5, %s528_s25  ;;  %p532_p9 = scmp.lt.u32.totalorder %s528_s25, %s750_s5 }
  0x16   :  { %p534_p10 = pnand %p532_p9, %p529_p8 }
  0x18   :  { %537 = shalt.err (!%p534_p10)
}
  0x19   :  { %s538_s30 = scalar_lea.vmem %s635_s12, 512  ;;  %p543_p12 = scmp.lt.s32.totalorder %s635_s12, %s635_s12 }
  0x1a   :  { %p539_p11 = scmp.ne.s32.totalorder %s635_s12, %s538_s30  ;;  %p544_p13 = scmp.lt.s32.totalorder %s538_s30, %s538_s30 }
  0x1c   :  { %p545_p0 = por %p544_p13, %p543_p12 }
  0x1e   :  { %p546_p1 = pnand %p545_p0, %p539_p11 }
  0x20   :  { %549 = shalt.err (!%p546_p1)
}
  0x21   :  { %s580_s0 = smov 64   ;;  %s581_s10 = smov 4  }
  0x22   :  { %46 = dma.hbm_to_vmem [thread:$0]  %s750_s5, 512, %s635_s12, [#allocation6], %s580_s0, %s580_s0, %s581_s10  }
  0x23   :  { %572 = dma.done.wait [#allocation3], 128  }
  0x24   :  { %573 = vsyncadd [#allocation3], 4294967168 }
  0x25   :  { %574 = dma.done.wait [#allocation6], 512  }
  0x26   :  { %575 = vsyncadd [#allocation6], 4294966784  ;;  %v582_v0 = vmov 0.0   ;;  %vm583_vm0 = vmmov 0   ;;  %v492_v1 = vld [vmem:[%s746_s1] sm:$0xff]   ;;  %v493_v2 = vld [vmem:[%s746_s1 + $0x8] sm:$0xff]  }
  0x27   :  { %441 = vmatprep.subr.bf16.mxu0 %v582_v0  ;;  %445 = vmatprep.mubr.msk.bf16.mxu0 %vm583_vm0, %v582_v0  ;;  %v60_v3 = vld [vmem:[#allocation2] sm:$0xff]  ;;  %vm85_vm1 = vcmask 261120   ;;  %v495_v5 = vld [vmem:[%s748_s3 + $0x8] sm:$0xff]   ;;  %v496_v7 = vld [vmem:[%s748_s3 + $0x10] sm:$0xff]   ;;  %vm170_vm2 = vcmask 523264   ;;  %vm383_vm3 = vcmask 130048  }
  0x28   :  { %449 = vmatprep.subr.bf16.mxu1 %v582_v0  ;;  %457 = vmatprep.mubr.msk.bf16.mxu1 %vm583_vm0, %v582_v0  ;;  %v494_v4 = vld [vmem:[%s748_s3] sm:$0xff]   ;;  %v61_v6 = vpack.c.bf16 %v60_v3, %v60_v3  ;;  %v497_v8 = vld [vmem:[%s748_s3 + $0x18] sm:$0xff]   ;;  %v498_v9 = vld [vmem:[#allocation5] sm:$0xff]  }
  0x29   :  { %442 = vmatpush3.bf16.msra.mxu0 %v492_v1  ;;  %450 = vmatpush3.bf16.msra.mxu1 %v494_v4  ;;  %v499_v10 = vld [vmem:[#allocation5 + $0x8] sm:$0xff]   ;;  %v401_v11 = vld [vmem:[%s747_s2] ss:$0 sm:$0xff]  ;;  %v500_v19 = vld [vmem:[#allocation5 + $0x10] sm:$0xff]  }
  0x2a   :  { %443 = vmatprep.subr.bf16.mxu0 %v582_v0  ;;  %451 = vmatprep.subr.bf16.mxu1 %v582_v0  ;;  %v501_v20 = vld [vmem:[#allocation5 + $0x18] sm:$0xff]   ;;  %v503_v22 = vld [vmem:[%s752_s7 + $0x8] sm:$0xff]   ;;  %v504_v31 = vld [vmem:[%s752_s7 + $0x10] sm:$0xff]  }
  0x2b   :  { %v502_v21 = vld [vmem:[%s752_s7] sm:$0xff]   ;;  %v505_v32 = vld [vmem:[%s752_s7 + $0x18] sm:$0xff]   ;;  %s584_s7 = smov [#allocation7]  }
  0x2c   :  { %v405_v23 = vld [vmem:[%s749_s4] ss:$0 sm:$0xff]  ;;  %s391_s15 = sshll.u32 %s584_s7, 4  ;;  %s392_s15 = int_to_ptr.vmem [resolvable:$true] %s391_s15 }
  0x2d   :  { %444 = vmatpush3.bf16.msra.mxu0 %v493_v2  ;;  %452 = vmatpush3.bf16.msra.mxu1 %v495_v5  ;;  %v411_v33 = vld [vmem:[%s751_s6] ss:$0 sm:$0xff]  ;;  %s550_s6 = scalar_lea.vmem %s392_s15, 128  ;;  %p555_p3 = scmp.lt.s32.totalorder %s392_s15, %s392_s15 }
  0x2e   :  { %461 = vmatprep.subr.bf16.mxu0 %v582_v0  ;;  %453 = vmatprep.subr.bf16.mxu1 %v582_v0  ;;  %v417_v41 = vld [vmem:[%s753_s8] ss:$0 sm:$0xff]  ;;  %p551_p2 = scmp.ne.s32.totalorder %s392_s15, %s550_s6  ;;  %p556_p4 = scmp.lt.s32.totalorder %s550_s6, %s550_s6 }
  0x30   :  { %446 = vmatmul.mubr.msk.bf16.vlgmr.msra.gmra.mrb[0].mxu0 %vm85_vm1, %v61_v6  ;;  %p557_p5 = por %p556_p4, %p555_p3 }
  0x31   :  { %469 = vmatprep.mubr.msk.bf16.mxu0 %vm583_vm0, %v582_v0  ;;  %454 = vmatpush3.bf16.msra.mxu1 %v496_v7 }
  0x32   :  { %455 = vmatprep.subr.bf16.mxu1 %v582_v0  ;;  %462 = vmatpush3.bf16.msra.mxu0 %v498_v9  ;;  %p558_p6 = pnand %p557_p5, %p551_p2 }
  0x33   :  { %463 = vmatprep.subr.bf16.mxu0 %v582_v0 }
  0x35   :  { %456 = vmatpush3.bf16.msra.mxu1 %v497_v8 }
  0x36   :  { %473 = vmatprep.subr.bf16.mxu1 %v582_v0  ;;  %464 = vmatpush3.bf16.msra.mxu0 %v499_v10 }
  0x37   :  { %465 = vmatprep.subr.bf16.mxu0 %v582_v0 }
  0x3a   :  { %466 = vmatpush3.bf16.msra.mxu0 %v500_v19 }
  0x3b   :  { %467 = vmatprep.subr.bf16.mxu0 %v582_v0 }
  0x3e   :  { %468 = vmatpush3.bf16.msra.mxu0 %v501_v20 }
 0x103   :  { %v123_v12 = vpop.f32.mrb[0].mxu0 }
 0x104   :  { %v124_v13 = vadd.f32 %v401_v11, %v123_v12  ;;  %v447_v14 = vpop.f32.mrb[1].mxu0 }
 0x105   :  { %v126_v15 = vpop.f32.mrb[2].mxu0 }
 0x106   :  { %v129_v16 = vmax.f32 %v124_v13, 0.0  ;;  %v448_v17 = vpop.f32.mrb[3].mxu0 }
 0x108   :  { %v130_v18 = vpack.c.bf16 %v129_v16, %v129_v16 }
 0x10a   :  { %458 = vmatmul.mubr.msk.bf16.vlgmr.msra.gmra.mrb[0].mxu1 %vm170_vm2, %v130_v18 }
 0x10b   :  { %481 = vmatprep.mubr.msk.bf16.mxu1 %vm583_vm0, %v582_v0  ;;  %474 = vmatpush3.bf16.msra.mxu1 %v502_v21 }
 0x10c   :  { %475 = vmatprep.subr.bf16.mxu1 %v582_v0 }
 0x10f   :  { %476 = vmatpush3.bf16.msra.mxu1 %v503_v22 }
 0x110   :  { %477 = vmatprep.subr.bf16.mxu1 %v582_v0 }
 0x113   :  { %478 = vmatpush3.bf16.msra.mxu1 %v504_v31 }
 0x114   :  { %479 = vmatprep.subr.bf16.mxu1 %v582_v0 }
 0x117   :  { %480 = vmatpush3.bf16.msra.mxu1 %v505_v32 }
 0x1dd   :  { %v208_v24 = vpop.f32.mrb[0].mxu1 }
 0x1de   :  { %v209_v25 = vadd.f32 %v405_v23, %v208_v24  ;;  %v459_v26 = vpop.f32.mrb[1].mxu1 }
 0x1df   :  { %v211_v27 = vpop.f32.mrb[2].mxu1 }
 0x1e0   :  { %v214_v28 = vmax.f32 %v209_v25, 0.0  ;;  %v460_v29 = vpop.f32.mrb[3].mxu1 }
 0x1e2   :  { %v215_v30 = vpack.c.bf16 %v214_v28, %v214_v28 }
 0x1e4   :  { %470 = vmatmul.mubr.msk.bf16.vlgmr.msra.gmra.mrb[4].mxu0 %vm170_vm2, %v215_v30 }
 0x2b7   :  { %v292_v34 = vpop.f32.mrb[4].mxu0 }
 0x2b8   :  { %v293_v35 = vadd.f32 %v411_v33, %v292_v34  ;;  %v471_v36 = vpop.f32.mrb[5].mxu0 }
 0x2b9   :  { %v295_v37 = vpop.f32.mrb[6].mxu0 }
 0x2ba   :  { %v298_v38 = vmax.f32 %v293_v35, 0.0  ;;  %v472_v39 = vpop.f32.mrb[7].mxu0 }
 0x2bc   :  { %v299_v40 = vpack.c.bf16 %v298_v38, %v298_v38 }
 0x2be   :  { %482 = vmatmul.mubr.msk.bf16.vlgmr.msra.gmra.mrb[4].mxu1 %vm170_vm2, %v299_v40 }
 0x391   :  { %v376_v42 = vpop.f32.mrb[4].mxu1 }
 0x392   :  { %v377_v43 = vadd.f32 %v417_v41, %v376_v42  ;;  %v483_v44 = vpop.f32.mrb[5].mxu1 }
 0x393   :  { %v379_v45 = vpop.f32.mrb[6].mxu1 }
 0x394   :  { %v382_v46 = vmax.f32 %v377_v43, 0.0  ;;  %v484_v47 = vpop.f32.mrb[7].mxu1 }
 0x396   :  { %384 = vst.msk [vmem:[#allocation7] sm:$0xff] %vm383_vm3, %v382_v46 }
 0x397   :  { %561 = shalt.err (!%p558_p6)
}
 0x398   :  { %s562_s12 = scalar_lea.hbm %s754_s9, 128 }
 0x399   :  { %p563_p7 = scmp.ne.s32.totalorder %s754_s9, %s562_s12  ;;  %p566_p8 = scmp.lt.u32.totalorder %s562_s12, %s754_s9 }
 0x39b   :  { %p568_p9 = pnand %p566_p8, %p563_p7 }
 0x39d   :  { %571 = shalt.err (!%p568_p9)
}
 0x39e   :  { %394 = dma.vmem_to_hbm [thread:$0]  %s392_s15, 128, %s754_s9, [#allocation4]  }
 0x39f   :  { %576 = dma.done.wait [#allocation4], 128  }
 0x3a0   :  { %577 = vsyncadd [#allocation4], 4294967168 }
 0x3a1   :  { %398 = vsyncpa [#allocation3], 1 }
 0x3a2   :  { %399 = vsyncpa [#allocation6], 1 }
 0x3a3   :  { %400 = vsyncpa [#allocation4], 1 }

</bundles_post_ra>
